<compile_context>
chip_gen: v5e
topology: v5e:2x2
jax: 0.10.0
libtpu: 0.0.40
codegen_flags: <defaults>
</compile_context>

<pallas_src>
import functools

import jax
import jax.numpy as jnp
from jax.experimental import pallas as pl
from jax.experimental.pallas import tpu as pltpu


_LANE = 128                      # lane width (last dim) for lane-dense blocks
_VMEM_BUDGET = 16 * 1024 * 1024  # target per-step double-buffered working set
_VMEM_LIMIT = 32 * 1024 * 1024   # scoped-VMEM limit; safe on v5e/v6e/v7x


# --------------------------------------------------------------------------
# Kernels
# --------------------------------------------------------------------------

def _mask_kernel(x_ref, s_ref, out_ref, *, value):
    """out = x*S + value*(1-S), fused as S*(x - value) + value."""
    v = jnp.asarray(value, out_ref.dtype)
    s = s_ref[...].astype(out_ref.dtype)          # in-kernel cast (free on VPU)
    out_ref[...] = s * (x_ref[...] - v) + v


def _mask_append_fullrow_kernel(x_ref, s_ref, out_ref, *, value, features):
    """append=True, batch-only grid, output block spans the full 2*F width.

    `features` is a multiple of 128 (guaranteed by the wrapper), so both
    slice stores start at lane-aligned offsets -> unmasked vst.
    """
    v = jnp.asarray(value, out_ref.dtype)
    s = s_ref[...].astype(out_ref.dtype)
    out_ref[:, :features] = s * (x_ref[...] - v) + v
    out_ref[:, features:] = s


def _mask_append_split_kernel(x_ref, s_ref, out_ref, *, value):
    """append=True fallback for very large F (full-row block would not fit VMEM).

    The feature grid axis is doubled and interleaved: even steps write the
    masked tile, odd steps copy the S tile into the appended half (selected by
    the output index_map).  Consecutive (even, odd) steps map to the same
    input block, so the pipeline does not re-DMA x/S for the copy step.
    """
    j = pl.program_id(1)
    v = jnp.asarray(value, out_ref.dtype)
    s = s_ref[...].astype(out_ref.dtype)

    @pl.when(j % 2 == 0)
    def _():
        out_ref[...] = s * (x_ref[...] - v) + v

    @pl.when(j % 2 == 1)
    def _():
        out_ref[...] = s


# --------------------------------------------------------------------------
# Tiling helpers
# --------------------------------------------------------------------------

def _pick_tile(dim, unit, cap):
    """Block size along one axis: a multiple of `unit` honoring `cap`.

    Used with a cdiv grid, so the last block may be ragged (Pallas handles
    the out-of-bounds portion).  An exact divisor is preferred when one
    exists within the cap to avoid the ragged block entirely.  When
    dim <= unit the full dim is returned (block equal to full array dim is
    always legal).
    """
    if dim <= unit:
        return dim
    cap = max(unit, min(cap, dim))
    t = (cap // unit) * unit
    m = t
    while m >= unit:                      # prefer an exact divisor <= cap
        if dim % m == 0:
            return m
        m -= unit
    return t


def _divisor_tile(dim, unit, cap):
    """Largest multiple of `unit` that divides `dim` (dim % unit == 0) and <= cap."""
    best = unit
    m = unit
    limit = min(cap, dim)
    while m <= limit:
        if dim % m == 0:
            best = m
        m += unit
    return best


# --------------------------------------------------------------------------
# Wrapper
# --------------------------------------------------------------------------

def _mask_layer1d_call(x, S, *, value, append, max_block_batch,
                       max_block_features, vmem_budget):
    """Dispatch + pallas_call.  For append=True, F must be a multiple of 128."""
    B, F = x.shape
    x_item = jnp.dtype(x.dtype).itemsize
    s_item = jnp.dtype(S.dtype).itemsize
    sub = {4: 8, 2: 16, 1: 32}.get(x_item, 8)    # sublane multiple for x dtype

    out_F = 2 * F if append else F
    out_shape = jax.ShapeDtypeStruct((B, out_F), x.dtype)

    cost = pl.CostEstimate(
        flops=2 * B * F,
        transcendentals=0,
        bytes_accessed=B * F * (x_item + s_item) + B * out_F * x_item,
    )

    if append:
        # Preferred: batch-only grid, full-width (TB, 2F) lane-dense output
        # block, two aligned slice stores.  Fewer pipeline steps than the
        # doubled feature grid.
        fullrow_bytes = 2 * (F * x_item + F * s_item + 2 * F * x_item)
        if sub * fullrow_bytes <= vmem_budget:
            tb_cap = min(max_block_batch, vmem_budget // fullrow_bytes)
            TB = _pick_tile(B, sub, tb_cap)
            grid = (pl.cdiv(B, TB),)
            kernel = functools.partial(_mask_append_fullrow_kernel,
                                       value=value, features=F)
            in_specs = [pl.BlockSpec((TB, F), lambda i: (i, 0)),
                        pl.BlockSpec((TB, F), lambda i: (i, 0))]
            out_specs = pl.BlockSpec((TB, 2 * F), lambda i: (i, 0))
            dims = ("parallel",)
        else:
            # Large-F fallback: doubled, interleaved feature grid.
            TF = _divisor_tile(F, _LANE, max_block_features)
            tile_bytes = 2 * TF * (2 * x_item + s_item)
            tb_cap = min(max_block_batch, max(sub, vmem_budget // tile_bytes))
            TB = _pick_tile(B, sub, tb_cap)
            nf = F // TF
            grid = (pl.cdiv(B, TB), 2 * nf)
            kernel = functools.partial(_mask_append_split_kernel, value=value)
            in_specs = [pl.BlockSpec((TB, TF), lambda i, j: (i, j // 2)),
                        pl.BlockSpec((TB, TF), lambda i, j: (i, j // 2))]
            out_specs = pl.BlockSpec(
                (TB, TF), lambda i, j: (i, (j % 2) * nf + j // 2))
            dims = ("parallel", "parallel")
    else:
        TF = _pick_tile(F, _LANE, max_block_features)
        tile_bytes = 2 * TF * (2 * x_item + s_item)
        tb_cap = min(max_block_batch, max(sub, vmem_budget // tile_bytes))
        TB = _pick_tile(B, sub, tb_cap)
        grid = (pl.cdiv(B, TB), pl.cdiv(F, TF))
        kernel = functools.partial(_mask_kernel, value=value)
        in_specs = [pl.BlockSpec((TB, TF), lambda i, j: (i, j)),
                    pl.BlockSpec((TB, TF), lambda i, j: (i, j))]
        out_specs = pl.BlockSpec((TB, TF), lambda i, j: (i, j))
        dims = ("parallel", "parallel")

    return pl.pallas_call(
        kernel,
        out_shape=out_shape,
        grid=grid,
        in_specs=in_specs,
        out_specs=out_specs,
        compiler_params=pltpu.CompilerParams(
            dimension_semantics=dims,
            vmem_limit_bytes=_VMEM_LIMIT,
        ),
        cost_estimate=cost,
    )(x, S)


def mask_layer1d(x, S, *, value, append,
                 max_block_batch=1024, max_block_features=512,
                 vmem_budget=_VMEM_BUDGET):
    """Pallas implementation of MaskLayer1d.forward((x, S))."""
    assert x.ndim == 2 and x.shape == S.shape
    # Keep S in its native (narrow) dtype across the pallas_call boundary;
    # the cast to x.dtype happens inside the kernel.  Bool is viewed as int8.
    if S.dtype == jnp.bool_:
        S = S.astype(jnp.int8)

    B, F = x.shape

    if append and F % _LANE != 0:
        # Pad the feature axis to the next multiple of 128 so every store in
        # the append path is lane-aligned, then slice the result.  The pad /
        # slice are cheap XLA-level ops; lane-dense output stores are the
        # biggest single measured lever on TPU.
        f_pad = -(-F // _LANE) * _LANE
        pad = ((0, 0), (0, f_pad - F))
        out_pad = _mask_layer1d_call(
            jnp.pad(x, pad), jnp.pad(S, pad),
            value=value, append=True,
            max_block_batch=max_block_batch,
            max_block_features=max_block_features,
            vmem_budget=vmem_budget)
        return jnp.concatenate(
            [out_pad[:, :F], out_pad[:, f_pad:f_pad + F]], axis=1)

    return _mask_layer1d_call(
        x, S, value=value, append=append,
        max_block_batch=max_block_batch,
        max_block_features=max_block_features,
        vmem_budget=vmem_budget)


# --------------------------------------------------------------------------
# Self-test
# --------------------------------------------------------------------------

if __name__ == "__main__":
    VALUE = 0.5
    key = jax.random.PRNGKey(0)

    def reference(x, S_f, value, append):
        out = x * S_f + value * (1.0 - S_f)
        return jnp.concatenate([out, S_f], axis=1) if append else out

    # Small configs exercising every code path:
    #   * unaligned-F append (pad + full-row path)
    #   * aligned-F append (full-row path)
    #   * forced split (doubled-grid) append fallback via tiny vmem_budget
    #   * plain mask with tiled grid and with ragged cdiv blocks
    #   * narrow (int8) S exercising the in-kernel cast
    configs = [
        dict(B=8, F=32, append=True),
        dict(B=8, F=32, append=False),
        dict(B=32, F=256, append=True),
        dict(B=32, F=256, append=True, vmem_budget=32 * 1024,
             max_block_features=128),
        dict(B=32, F=256, append=False, max_block_batch=8,
             max_block_features=128),
        dict(B=13, F=200, append=False, max_block_batch=8,
             max_block_features=128),
        dict(B=16, F=256, append=True, s_dtype=jnp.int8),
    ]

    for cfg in configs:
        B, F, append = cfg["B"], cfg["F"], cfg["append"]
        s_dtype = cfg.get("s_dtype", jnp.float32)
        extra = {k: v for k, v in cfg.items()
                 if k in ("max_block_batch", "max_block_features", "vmem_budget")}

        key, kx, ks = jax.random.split(key, 3)
        x = jax.random.normal(kx, (B, F), dtype=jnp.float32)
        S = (jax.random.uniform(ks, (B, F)) > 0.5).astype(s_dtype)

        out = mask_layer1d(x, S, value=VALUE, append=append, **extra)
        out = jax.block_until_ready(out)

        ref = reference(x, S.astype(jnp.float32), VALUE, append)
        assert out.shape == ref.shape, (cfg, out.shape, ref.shape)
        assert jnp.allclose(out, ref, atol=1e-5, rtol=1e-5), f"mismatch: {cfg}"

    print("KERNEL_OK")
</pallas_src>

<mosaic_0001>
module attributes {stable_mosaic.version = 11 : i64} {
  func.func @_mask_append_fullrow_kernel(%arg0: i32, %arg1: memref<8x128xf32, #tpu.memory_space<vmem>>, %arg2: memref<8x128xf32, #tpu.memory_space<vmem>>, %arg3: memref<8x256xf32, #tpu.memory_space<vmem>>) attributes {dimension_semantics = [#tpu.dimension_semantics<parallel>], iteration_bounds = array<i64: 1>, scalar_prefetch = 0 : i64, scratch_operands = 0 : i64, tpu.core_type = #tpu.core_type<tc>, window_params = [{transform_indices = @transform_0, window_bounds = array<i64: 8, 128>}, {transform_indices = @transform_1, window_bounds = array<i64: 8, 128>}, {transform_indices = @transform_2, window_bounds = array<i64: 8, 256>}]} {
    %c0 = arith.constant 0 : index
    %c0_0 = arith.constant 0 : index
    %0 = vector.load %arg2[%c0, %c0_0] : memref<8x128xf32, #tpu.memory_space<vmem>>, vector<8x128xf32>
    %c0_1 = arith.constant 0 : index
    %c0_2 = arith.constant 0 : index
    %1 = vector.load %arg1[%c0_1, %c0_2] : memref<8x128xf32, #tpu.memory_space<vmem>>, vector<8x128xf32>
    %cst = arith.constant 5.000000e-01 : f32
    %2 = vector.broadcast %cst : f32 to vector<8x128xf32>
    %3 = arith.subf %1, %2 : vector<8x128xf32>
    %4 = arith.mulf %0, %3 : vector<8x128xf32>
    %cst_3 = arith.constant 5.000000e-01 : f32
    %5 = vector.broadcast %cst_3 : f32 to vector<8x128xf32>
    %6 = arith.addf %4, %5 : vector<8x128xf32>
    %c0_4 = arith.constant 0 : index
    %c0_5 = arith.constant 0 : index
    %7 = vector.load %arg3[%c0_4, %c0_5] : memref<8x256xf32, #tpu.memory_space<vmem>>, vector<8x128xf32>
    tpu.vector_store %arg3[%c0_4, %c0_5], %6 {strides = array<i32>} : memref<8x256xf32, #tpu.memory_space<vmem>>, vector<8x128xf32>,
    %c0_6 = arith.constant 0 : index
    %c128 = arith.constant 128 : index
    %8 = vector.load %arg3[%c0_6, %c128] : memref<8x256xf32, #tpu.memory_space<vmem>>, vector<8x128xf32>
    tpu.vector_store %arg3[%c0_6, %c128], %0 {strides = array<i32>} : memref<8x256xf32, #tpu.memory_space<vmem>>, vector<8x128xf32>,
    return
  }
  func.func @transform_0(%arg0: i32) -> (i32, i32) {
    %c0_i32 = arith.constant 0 : i32
    %c0_i32_0 = arith.constant 0 : i32
    return %arg0, %c0_i32 : i32, i32
  }
  func.func @transform_1(%arg0: i32) -> (i32, i32) {
    %c0_i32 = arith.constant 0 : i32
    %c0_i32_0 = arith.constant 0 : i32
    return %arg0, %c0_i32 : i32, i32
  }
  func.func @transform_2(%arg0: i32) -> (i32, i32) {
    %c0_i32 = arith.constant 0 : i32
    %c0_i32_0 = arith.constant 0 : i32
    return %arg0, %c0_i32 : i32, i32
  }
}

</mosaic_0001>

<bundles_post_ra>
// kernel: tpu_custom_call.1
= control target key start
LH: loop header
LB: loop body
LE: loop exit
PB: predicated region body
PF: predicated region fallthrough
CT: control target
= control target key end

     0   :  { %7 = vsyncpa [#allocation3], 0  ;;  %s174_s0 = inlined_call_operand.hbm [shape: f32[8,128], index: 0, kind: input, shape index: {}]   ;;  %s175_s1 = inlined_call_operand.hbm [shape: f32[8,128], index: 1, kind: input, shape index: {}]   ;;  %s176_s2 = inlined_call_operand.hbm [shape: f32[8,256], index: 2, kind: output, shape index: {}]  }
   0x1   :  { %8 = vsyncpa [#allocation6], 0 }
   0x2   :  { %9 = vsyncpa [#allocation4], 0  ;;  %s15_s11 = sshll.u32 %s174_s0, 4  ;;  %s147_s12 = smov [#allocation2]   ;;  %s16_s11 = int_to_ptr.hbm [resolvable:$true] %s15_s11 }
   0x3   :  { %s17_s13 = sshll.u32 %s147_s12, 4  ;;  %s26_s16 = sshll.u32 %s175_s1, 4  ;;  %s18_s13 = int_to_ptr.vmem [resolvable:$true] %s17_s13  ;;  %s27_s16 = int_to_ptr.hbm [resolvable:$true] %s26_s16 }
   0x4   :  { %20 = dma.hbm_to_vmem [thread:$0]  %s16_s11, 128, %s18_s13, [#allocation3]  }
   0x5   :  { %s148_s17 = smov [#allocation5]  }
   0x6   :  { %s28_s18 = sshll.u32 %s148_s17, 4  ;;  %s29_s18 = int_to_ptr.vmem [resolvable:$true] %s28_s18 }
   0x7   :  { %31 = dma.hbm_to_vmem [thread:$0]  %s27_s16, 128, %s29_s18, [#allocation6]  }
   0x8   :  { %141 = dma.done.wait [#allocation3], 128  }
   0x9   :  { %142 = vsyncadd [#allocation3], 4294967168 }
   0xa   :  { %143 = dma.done.wait [#allocation6], 128  }
   0xb   :  { %144 = vsyncadd [#allocation6], 4294967168  ;;  %v40_v0 = vld [vmem:[#allocation5] sm:$0xff]  ;;  %v41_v1 = vld [vmem:[#allocation2] sm:$0xff]  ;;  %s149_s0 = smov [#allocation7]   ;;  %s54_s1 = sshll.u32 %s176_s2, 4  ;;  %s55_s1 = int_to_ptr.hbm [resolvable:$true] %s54_s1 }
   0xc   :  { %v65_v2 = vadd.f32 -0.5, %v41_v1  ;;  %46 = vst [vmem:[#allocation7 + $0x8] sm:$0xff] %v40_v0  ;;  %s52_s19 = sshll.u32 %s149_s0, 4  ;;  %s53_s19 = int_to_ptr.vmem [resolvable:$true] %s52_s19 }
   0xe   :  { %v43_v3 = vmul.f32 %v65_v2, %v40_v0 }
  0x10   :  { %v44_v4 = vadd.f32 0.5, %v43_v3 }
  0x12   :  { %45 = vst [vmem:[#allocation7] sm:$0xff] %v44_v4 }
  0x13   :  { %57 = dma.vmem_to_hbm [thread:$0]  %s53_s19, 256, %s55_s1, [#allocation4]  }
  0x14   :  { %145 = dma.done.wait [#allocation4], 256  }
  0x15   :  { %146 = vsyncadd [#allocation4], 4294967040 }
  0x16   :  { %62 = vsyncpa [#allocation3], 1 }
  0x17   :  { %63 = vsyncpa [#allocation6], 1 }
  0x18   :  { %64 = vsyncpa [#allocation4], 1 }

</bundles_post_ra>
